<compile_context>
chip_gen: v7x
topology: tpu7x:2x2x1
jax: 0.10.0
libtpu: 0.0.40
codegen_flags: <defaults>
</compile_context>

<pallas_src>
import jax
import jax.numpy as jnp
from jax.experimental import pallas as pl
from jax.experimental.pallas import tpu as pltpu

N_STATE_OBS = 15  # int(np.sum(np.diff([[0, 15]]))) from the module's __init__


def _identity_dma_kernel(x_hbm_ref, o_hbm_ref, sem):
    # Single HBM->HBM DMA: no VMEM staging, no TensorCore vld/vst copy, no grid.
    cp = pltpu.make_async_copy(x_hbm_ref, o_hbm_ref, sem)
    cp.start()
    cp.wait()


def proprioception_encoder_copy(x: jax.Array) -> jax.Array:
    """Cold/debug path: materialized identity (distinct output buffer) as one HBM->HBM DMA.

    Latency-bound at realistic (batch, 15) sizes; only use when a distinct buffer is
    contractually required. The hot path is `proprioception_encoder` (no kernel at all).
    """
    nbytes = x.size * x.dtype.itemsize
    return pl.pallas_call(
        _identity_dma_kernel,
        out_shape=jax.ShapeDtypeStruct(x.shape, x.dtype),
        in_specs=[pl.BlockSpec(memory_space=pl.ANY)],   # leave input in HBM, no auto-DMA
        out_specs=pl.BlockSpec(memory_space=pl.ANY),    # leave output in HBM
        scratch_shapes=[pltpu.SemaphoreType.DMA(())],
        # Tell XLA this custom call is negligible (read + write of the tensor, no flops).
        cost_estimate=pl.CostEstimate(
            flops=0, transcendentals=0, bytes_accessed=2 * nbytes),
    )(x)


def proprioception_encoder(x: jax.Array) -> jax.Array:
    """Forward pass of ProprioceptionEncoder: y = Identity(x).

    Hot path: a no-op. Strictly faster than any kernel on v5e/v6e/v7x —
    zero launch overhead, zero HBM traffic, and XLA can fuse/elide it entirely.
    """
    return x


class ProprioceptionEncoderPallas:
    """Thin wrapper mirroring the PyTorch module's interface (no parameters)."""

    def __init__(self):
        self.n_state_obs = N_STATE_OBS

    @property
    def out_features(self):
        return self.n_state_obs

    def __call__(self, x, materialize: bool = False):
        # materialize=True forces a distinct output buffer via the DMA kernel (cold path).
        return proprioception_encoder_copy(x) if materialize else proprioception_encoder(x)


if __name__ == "__main__":
    key = jax.random.PRNGKey(0)
    batch = 2
    x = jax.random.normal(key, (batch, N_STATE_OBS), dtype=jnp.float32)

    enc = ProprioceptionEncoderPallas()

    # Hot path (identity, no kernel).
    y_fast = jax.block_until_ready(enc(x))
    assert y_fast.shape == x.shape and y_fast.dtype == x.dtype
    assert bool(jnp.all(y_fast == x))

    # Cold path: run the Pallas DMA kernel once and verify byte-exact copy.
    y_copy = jax.block_until_ready(enc(x, materialize=True))
    assert y_copy.shape == x.shape and y_copy.dtype == x.dtype
    assert bool(jnp.all(y_copy == x))

    assert enc.out_features == 15

    print("KERNEL_OK")
</pallas_src>

<mosaic_0001>
module attributes {stable_mosaic.version = 11 : i64} {
  func.func @_identity_dma_kernel(%arg0: memref<2x15xf32, #tpu.memory_space<any>>, %arg1: memref<2x15xf32, #tpu.memory_space<any>>, %arg2: memref<!tpu.dma_semaphore, #tpu.memory_space<semaphore_mem>>) attributes {dimension_semantics = [], scalar_prefetch = 0 : i64, scratch_operands = 1 : i64, tpu.core_type = #tpu.core_type<tc>} {
    tpu.enqueue_dma source(%arg0 : memref<2x15xf32, #tpu.memory_space<any>>) target(%arg1 : memref<2x15xf32, #tpu.memory_space<any>>) target_semaphore(%arg2 : memref<!tpu.dma_semaphore, #tpu.memory_space<semaphore_mem>>)
    tpu.wait_dma2 semaphore(%arg2 : memref<!tpu.dma_semaphore, #tpu.memory_space<semaphore_mem>>) src(%arg0 : memref<2x15xf32, #tpu.memory_space<any>>) dst(%arg1 : memref<2x15xf32, #tpu.memory_space<any>>)
    return
  }
}

</mosaic_0001>

<bundles_post_ra>
// kernel: tpu_custom_call.1
= control target key start
LH: loop header
LB: loop body
LE: loop exit
PB: predicated region body
PF: predicated region fallthrough
CT: control target
= control target key end

     0   :  { %s34_s6 = smov [#allocation2]   ;;  %s35_s7 = smov [#allocation3]   ;;  %s53_s0 = inlined_call_operand.hbm [shape: f32[2,15], index: 0, kind: input, shape index: {}]   ;;  %s54_s1 = inlined_call_operand.hbm [shape: f32[2,15], index: 1, kind: output, shape index: {}]  }
   0x1   :  { %s36_s8 = smov 0  }
   0x2   :  { %18 = dma.general %s53_s0, 32, %s54_s1, %s34_s6, %s35_s7, [#allocation4], %s36_s8, 0  }
   0x3   :  { %32 = dma.done.wait [#allocation2], 32 }
   0x4   :  { %33 = vsyncadd [#allocation2], 4294967264 }
   0x5   :  { %22 = vsyncmov [#allocation2] }
   0x8   :  { %s23_s13 = vpop.sfrf %22 }
   0x9   :  { %p28_p0 = scmp.ne.s32.totalorder %s23_s13, 0 }
   0xb   :  { %27 = shalt.err (%p28_p0)  }

</bundles_post_ra>
